<compile_context>
chip_gen: v7x
topology: tpu7x:2x2x1
jax: 0.10.0
libtpu: 0.0.40
codegen_flags: <defaults>
</compile_context>

<pallas_src>
import functools
import math

import jax
import jax.numpy as jnp
import numpy as np
from jax.experimental import pallas as pl
from jax.experimental.pallas import tpu as pltpu


def _round_up(x, m):
    return ((x + m - 1) // m) * m


def _rbf_kernel(d_ref, s_ref, freq_ref, out_ref, *, inv_cutoff, p, a, b, c):
    # d_ref:    (T, G)     f32  — G edges per output row
    # s_ref:    (G, G*R)   f32  — 0/1 replication matrix, S[g, g*R + r] = 1
    # freq_ref: (1, G*R)   f32  — freq_lane[j] = frequencies[j % R]
    # out_ref:  (T, G*R)        — lane-dense view of the [E, R] output
    x = d_ref[...] * inv_cutoff                          # [T, G]

    # Envelope 1/x + a*x^(p-1) + b*x^p + c*x^(p+1), computed once per edge
    # (narrow [T, G]), exactly as in the reference.
    x_p0 = x ** (p - 1)
    x_p1 = x_p0 * x
    x_p2 = x_p1 * x
    env = 1.0 / x + a * x_p0 + b * x_p1 + c * x_p2       # [T, G]

    # Replicate each per-edge value across its R output lanes via the MXU.
    # S is exactly 0/1, so at HIGHEST precision this is a pure lane-expand
    # (no bf16 rounding of x / env).
    hi = jax.lax.Precision.HIGHEST
    x_rep = jnp.dot(x, s_ref[...], precision=hi,
                    preferred_element_type=jnp.float32)        # [T, G*R]
    env_rep = jnp.dot(env, s_ref[...], precision=hi,
                      preferred_element_type=jnp.float32)      # [T, G*R]

    out_ref[...] = (env_rep * jnp.sin(freq_ref[...] * x_rep)).astype(out_ref.dtype)


def rbf_layer(d, frequencies, cutoff, envelope_exponent=5, *,
              block_edges=32768, out_dtype=jnp.float32):
    """d: [E] edge distances (>0); frequencies: [R]. Returns rbf: [E, R]."""
    E = int(d.shape[0])
    R = int(frequencies.shape[0])

    p = envelope_exponent + 1
    a = -(p + 1) * (p + 2) / 2.0
    b = p * (p + 2) * 1.0
    c = -p * (p + 1) / 2.0

    # Pack G edges per output row so the output lane width L = G*R is a
    # multiple of 128 (for R=8: G=16, L=128).
    G = 128 // math.gcd(128, R)
    L = G * R

    rows = pl.cdiv(E, G)
    # Rows per grid step: target ~block_edges edges/step, sublane-aligned (8).
    t_rows = max(8, min(_round_up(max(block_edges // G, 1), 8),
                        _round_up(rows, 8)))
    rows_pad = _round_up(rows, t_rows)
    e_pad = rows_pad * G

    d = d.astype(jnp.float32)
    if e_pad != E:
        # Pad with `cutoff` (finite, env(1)=0) so padded edges are finite and
        # cannot contaminate real lanes through the replication matmul.
        d = jnp.concatenate(
            [d, jnp.full((e_pad - E,), cutoff, jnp.float32)])
    d2 = d.reshape(rows_pad, G)

    # 0/1 replication matrix and lane-tiled frequencies (tiny, built once).
    s_np = np.zeros((G, L), np.float32)
    g_idx = np.arange(G)[:, None]
    r_idx = np.arange(R)[None, :]
    s_np[g_idx, g_idx * R + r_idx] = 1.0
    s_mat = jnp.asarray(s_np)
    freq_lane = jnp.tile(frequencies.astype(jnp.float32).reshape(1, R), (1, G))

    kernel = functools.partial(
        _rbf_kernel, inv_cutoff=1.0 / float(cutoff), p=p, a=a, b=b, c=c)

    out = pl.pallas_call(
        kernel,
        out_shape=jax.ShapeDtypeStruct((rows_pad, L), out_dtype),
        grid_spec=pltpu.PrefetchScalarGridSpec(
            num_scalar_prefetch=0,
            grid=(rows_pad // t_rows,),
            in_specs=[
                pl.BlockSpec((t_rows, G), lambda i: (i, 0)),   # d (contiguous)
                pl.BlockSpec((G, L), lambda i: (0, 0)),        # replication S
                pl.BlockSpec((1, L), lambda i: (0, 0)),        # tiled freqs
            ],
            out_specs=pl.BlockSpec((t_rows, L), lambda i: (i, 0)),
        ),
        compiler_params=pltpu.CompilerParams(
            dimension_semantics=("parallel",)),
    )(d2, s_mat, freq_lane)

    rbf = out.reshape(e_pad, R)      # free row-major view back to [E_pad, R]
    if e_pad != E:
        rbf = rbf[:E]
    return rbf


def rbf_layer_ref(d, frequencies, cutoff, envelope_exponent=5):
    """Pure-JAX reference matching the PyTorch forward."""
    p = envelope_exponent + 1
    a = -(p + 1) * (p + 2) / 2.0
    b = p * (p + 2) * 1.0
    c = -p * (p + 1) / 2.0
    d_scaled = (d / cutoff)[:, None]
    x_p_0 = d_scaled ** (p - 1)
    x_p_1 = x_p_0 * d_scaled
    x_p_2 = x_p_1 * d_scaled
    env = 1.0 / d_scaled + a * x_p_0 + b * x_p_1 + c * x_p_2
    return env * jnp.sin(frequencies[None, :] * d_scaled)


if __name__ == "__main__":
    key = jax.random.PRNGKey(0)

    num_radial = 8
    cutoff = 5.0
    envelope_exponent = 5

    # Deterministic parameter init: frequencies = pi * [1, 2, ..., num_radial]
    frequencies = jnp.asarray(
        np.pi * np.arange(1, num_radial + 1, dtype=np.float32))

    # Two edge counts: one aligned (256) and one ragged (250, exercises the
    # padding path).  Distances strictly positive (1/x term).
    for num_edges, subkey in zip((256, 250), jax.random.split(key, 2)):
        d = jax.random.uniform(subkey, (num_edges,), dtype=jnp.float32,
                               minval=0.1, maxval=cutoff)

        rbf = rbf_layer(d, frequencies, cutoff, envelope_exponent)
        rbf = jax.block_until_ready(rbf)

        ref = rbf_layer_ref(d, frequencies, cutoff, envelope_exponent)
        np.testing.assert_allclose(np.asarray(rbf), np.asarray(ref),
                                   rtol=2e-5, atol=5e-5)

    print("KERNEL_OK")
</pallas_src>

<mosaic_0001>
module attributes {stable_mosaic.version = 11 : i64} {
  func.func @_rbf_kernel(%arg0: i32, %arg1: memref<16x16xf32, #tpu.memory_space<vmem>>, %arg2: memref<16x128xf32, #tpu.memory_space<vmem>>, %arg3: memref<1x128xf32, #tpu.memory_space<vmem>>, %arg4: memref<16x128xf32, #tpu.memory_space<vmem>>) attributes {dimension_semantics = [#tpu.dimension_semantics<parallel>], iteration_bounds = array<i64: 1>, scalar_prefetch = 0 : i64, scratch_operands = 0 : i64, tpu.core_type = #tpu.core_type<tc>, window_params = [{transform_indices = @transform_0, window_bounds = array<i64: 16, 16>}, {pipeline_mode = #tpu.pipeline_mode<synchronous>, transform_indices = @transform_1, window_bounds = array<i64: 16, 128>}, {pipeline_mode = #tpu.pipeline_mode<synchronous>, transform_indices = @transform_2, window_bounds = array<i64: 1, 128>}, {transform_indices = @transform_3, window_bounds = array<i64: 16, 128>}]} {
    %c0 = arith.constant 0 : index
    %c0_0 = arith.constant 0 : index
    %0 = vector.load %arg1[%c0, %c0_0] : memref<16x16xf32, #tpu.memory_space<vmem>>, vector<16x16xf32>
    %cst = arith.constant 2.000000e-01 : f32
    %1 = vector.broadcast %cst : f32 to vector<16x16xf32>
    %2 = arith.mulf %0, %1 : vector<16x16xf32>
    %3 = arith.mulf %2, %2 : vector<16x16xf32>
    %4 = arith.mulf %3, %3 : vector<16x16xf32>
    %5 = arith.mulf %2, %4 : vector<16x16xf32>
    %6 = arith.mulf %5, %2 : vector<16x16xf32>
    %7 = arith.mulf %6, %2 : vector<16x16xf32>
    %cst_1 = arith.constant 1.000000e+00 : f32
    %8 = vector.broadcast %cst_1 : f32 to vector<16x16xf32>
    %9 = arith.divf %8, %2 : vector<16x16xf32>
    %cst_2 = arith.constant -2.800000e+01 : f32
    %10 = vector.broadcast %cst_2 : f32 to vector<16x16xf32>
    %11 = arith.mulf %10, %5 : vector<16x16xf32>
    %12 = arith.addf %9, %11 : vector<16x16xf32>
    %cst_3 = arith.constant 4.800000e+01 : f32
    %13 = vector.broadcast %cst_3 : f32 to vector<16x16xf32>
    %14 = arith.mulf %13, %6 : vector<16x16xf32>
    %15 = arith.addf %12, %14 : vector<16x16xf32>
    %cst_4 = arith.constant -2.100000e+01 : f32
    %16 = vector.broadcast %cst_4 : f32 to vector<16x16xf32>
    %17 = arith.mulf %16, %7 : vector<16x16xf32>
    %18 = arith.addf %15, %17 : vector<16x16xf32>
    %c0_5 = arith.constant 0 : index
    %c0_6 = arith.constant 0 : index
    %19 = vector.load %arg2[%c0_5, %c0_6] : memref<16x128xf32, #tpu.memory_space<vmem>>, vector<16x128xf32>
    %cst_7 = arith.constant dense<0.000000e+00> : vector<16x128xf32>
    %20 = tpu.matmul %2, %19, %cst_7 {dimension_numbers = #tpu.dot_dimension_numbers<[1], [0], [0], [1], [0, 0, 1, 1], [], []>, precision = #tpu.contract_precision<fp32>} : vector<16x16xf32>, vector<16x128xf32>, vector<16x128xf32> -> vector<16x128xf32>
    %c0_8 = arith.constant 0 : index
    %c0_9 = arith.constant 0 : index
    %21 = vector.load %arg2[%c0_8, %c0_9] : memref<16x128xf32, #tpu.memory_space<vmem>>, vector<16x128xf32>
    %cst_10 = arith.constant dense<0.000000e+00> : vector<16x128xf32>
    %22 = tpu.matmul %18, %21, %cst_10 {dimension_numbers = #tpu.dot_dimension_numbers<[1], [0], [0], [1], [0, 0, 1, 1], [], []>, precision = #tpu.contract_precision<fp32>} : vector<16x16xf32>, vector<16x128xf32>, vector<16x128xf32> -> vector<16x128xf32>
    %c0_11 = arith.constant 0 : index
    %c0_12 = arith.constant 0 : index
    %23 = vector.load %arg3[%c0_11, %c0_12] : memref<1x128xf32, #tpu.memory_space<vmem>>, vector<1x128xf32>
    %24 = vector.broadcast %23 : vector<1x128xf32> to vector<16x128xf32>
    %25 = arith.mulf %24, %20 : vector<16x128xf32>
    %26 = math.sin %25 : vector<16x128xf32>
    %27 = arith.mulf %22, %26 : vector<16x128xf32>
    %c0_13 = arith.constant 0 : index
    %c0_14 = arith.constant 0 : index
    %28 = vector.load %arg4[%c0_13, %c0_14] : memref<16x128xf32, #tpu.memory_space<vmem>>, vector<16x128xf32>
    tpu.vector_store %arg4[%c0_13, %c0_14], %27 {strides = array<i32>} : memref<16x128xf32, #tpu.memory_space<vmem>>, vector<16x128xf32>,
    return
  }
  func.func @transform_0(%arg0: i32) -> (i32, i32) {
    %c0_i32 = arith.constant 0 : i32
    %c0_i32_0 = arith.constant 0 : i32
    return %arg0, %c0_i32 : i32, i32
  }
  func.func @transform_1(%arg0: i32) -> (i32, i32) {
    %c0_i32 = arith.constant 0 : i32
    %c0_i32_0 = arith.constant 0 : i32
    %c0_i32_1 = arith.constant 0 : i32
    return %c0_i32, %c0_i32_0 : i32, i32
  }
  func.func @transform_2(%arg0: i32) -> (i32, i32) {
    %c0_i32 = arith.constant 0 : i32
    %c0_i32_0 = arith.constant 0 : i32
    %c0_i32_1 = arith.constant 0 : i32
    return %c0_i32, %c0_i32_0 : i32, i32
  }
  func.func @transform_3(%arg0: i32) -> (i32, i32) {
    %c0_i32 = arith.constant 0 : i32
    %c0_i32_0 = arith.constant 0 : i32
    return %arg0, %c0_i32 : i32, i32
  }
}

</mosaic_0001>

<bundles_post_ra>
// kernel: tpu_custom_call.1
= control target key start
LH: loop header
LB: loop body
LE: loop exit
PB: predicated region body
PF: predicated region fallthrough
CT: control target
= control target key end

     0   :  { %8 = vsyncpa [#allocation3], 0  ;;  %s1859_s0 = inlined_call_operand.hbm [shape: f32[16,16], index: 0, kind: input, shape index: {}]   ;;  %s1860_s1 = inlined_call_operand.hbm [shape: f32[16,128], index: 1, kind: input, shape index: {}]   ;;  %s1861_s2 = inlined_call_operand.vmem [shape: f32[1,128], index: 2, kind: input, shape index: {}]   ;;  %s1862_s3 = inlined_call_operand.hbm [shape: f32[16,128], index: 3, kind: output, shape index: {}]  }
   0x1   :  { %9 = vsyncpa [#allocation6], 0 }
   0x2   :  { %10 = vsyncpa [#allocation4], 0  ;;  %s1643_s12 = smov [#allocation2]   ;;  %s1571_s16 = scalar_lea.hbm %s1859_s0, 256 }
   0x3   :  { %s16_s13 = sshll.u32 %s1643_s12, 4  ;;  %p1572_p0 = scmp.ne.s32.totalorder %s1859_s0, %s1571_s16  ;;  %s17_s13 = int_to_ptr.vmem [resolvable:$true] %s16_s13 }
   0x4   :  { %p1575_p1 = scmp.lt.u32.totalorder %s1571_s16, %s1859_s0 }
   0x6   :  { %p1577_p2 = pnand %p1575_p1, %p1572_p0 }
   0x8   :  { %1580 = shalt.err (!%p1577_p2)
}
   0x9   :  { %s1581_s21 = scalar_lea.vmem %s17_s13, 256  ;;  %p1586_p4 = scmp.lt.s32.totalorder %s17_s13, %s17_s13 }
   0xa   :  { %p1582_p3 = scmp.ne.s32.totalorder %s17_s13, %s1581_s21  ;;  %p1587_p5 = scmp.lt.s32.totalorder %s1581_s21, %s1581_s21 }
   0xc   :  { %p1588_p6 = por %p1587_p5, %p1586_p4 }
   0xe   :  { %p1589_p7 = pnand %p1588_p6, %p1582_p3 }
  0x10   :  { %1592 = shalt.err (!%p1589_p7)
}
  0x11   :  { %s1644_s22 = smov 128   ;;  %s1645_s23 = smov 8  }
  0x12   :  { %22 = dma.hbm_to_vmem [thread:$0]  %s1859_s0, 256, %s17_s13, [#allocation3], %s1644_s22, %s1644_s22, %s1645_s23  }
  0x13   :  { %s1646_s26 = smov [#allocation5]   ;;  %s1593_s30 = scalar_lea.hbm %s1860_s1, 256 }
  0x14   :  { %s28_s27 = sshll.u32 %s1646_s26, 4  ;;  %p1594_p8 = scmp.ne.s32.totalorder %s1860_s1, %s1593_s30  ;;  %s29_s27 = int_to_ptr.vmem [resolvable:$true] %s28_s27 }
  0x15   :  { %p1597_p9 = scmp.lt.u32.totalorder %s1593_s30, %s1860_s1 }
  0x17   :  { %p1599_p10 = pnand %p1597_p9, %p1594_p8 }
  0x19   :  { %1602 = shalt.err (!%p1599_p10)
}
  0x1a   :  { %s1603_s8 = scalar_lea.vmem %s29_s27, 256  ;;  %p1608_p12 = scmp.lt.s32.totalorder %s29_s27, %s29_s27 }
  0x1b   :  { %p1604_p11 = scmp.ne.s32.totalorder %s29_s27, %s1603_s8  ;;  %p1609_p13 = scmp.lt.s32.totalorder %s1603_s8, %s1603_s8 }
  0x1d   :  { %p1610_p0 = por %p1609_p13, %p1608_p12 }
  0x1f   :  { %p1611_p1 = pnand %p1610_p0, %p1604_p11 }
  0x21   :  { %1614 = shalt.err (!%p1611_p1)
}
  0x22   :  { %34 = dma.hbm_to_vmem [thread:$0]  %s1860_s1, 256, %s29_s27, [#allocation6], %s1644_s22, %s1644_s22, %s1645_s23  }
  0x23   :  { %1637 = dma.done.wait [#allocation3], 256  }
  0x24   :  { %1638 = vsyncadd [#allocation3], 4294967040 }
  0x25   :  { %1639 = dma.done.wait [#allocation6], 256  }
  0x26   :  { %1640 = vsyncadd [#allocation6], 4294967040  ;;  %v73_v0 = vld [vmem:[#allocation5] sm:$0xff]  ;;  %v74_v1 = vld [vmem:[#allocation5 + $0x8] sm:$0xff]  ;;  %vm75_vm0 = vcmask 130048  }
  0x27   :  { %v43_v2 = vld [vmem:[#allocation2] sm:$0xff]  ;;  %v83_v3 = vand.u32 4294901760, %v73_v0  ;;  %v86_v4 = vand.u32 4294901760, %v74_v1  ;;  %v44_v6 = vld [vmem:[#allocation2 + $0x8] sm:$0xff] }
  0x28   :  { %v45_v5 = vmul.f32 0.2, %v43_v2  ;;  %v46_v7 = vmul.f32 0.2, %v44_v6 }
  0x29   :  { %v1704_v8 = vpack.c.bf16 %v86_v4, %v83_v3  ;;  %v1707_v10 = vsub.f32 %v73_v0, %v83_v3  ;;  %v1709_v11 = vsub.f32 %v74_v1, %v86_v4  ;;  %v1331_v4 = vld [vmem:[%s1861_s2] ss:$0 sm:$0xff]  ;;  %s1653_s2 = smov [#allocation7]  }
  0x2a   :  { %v77_v9 = vsel %vm75_vm0, %v45_v5, 0  ;;  %v80_v13 = vsel %vm75_vm0, %v46_v7, 0  ;;  %v47_v14 = vmul.f32 %v45_v5, %v45_v5  ;;  %1559 = vrcp.f32 %v45_v5  ;;  %s1318_s11 = sshll.u32 %s1653_s2, 4  ;;  %s1319_s11 = int_to_ptr.vmem [resolvable:$true] %s1318_s11 }
  0x2b   :  { %v1711_v12 = vand.u32 4294901760, %v77_v9  ;;  %1473 = vmatprep.subr.bf16.mxu0 %v1704_v8  ;;  %v172_v15 = vand.u32 4294901760, %v1707_v10  ;;  %v179_v16 = vand.u32 4294901760, %v1709_v11  ;;  %v1717_v17 = vand.u32 4294901760, %v80_v13  ;;  %1497 = vmatprep.subr.bf16.mxu1 %v1704_v8  ;;  %s1615_s12 = scalar_lea.vmem %s1319_s11, 256  ;;  %p1620_p3 = scmp.lt.s32.totalorder %s1319_s11, %s1319_s11 }
  0x2c   :  { %1475 = vmatpush3.bf16.msra.mxu0 %v1704_v8  ;;  %1499 = vmatpush3.bf16.msra.mxu1 %v1704_v8  ;;  %v49_v19 = vmul.f32 %v47_v14, %v47_v14  ;;  %v48_v20 = vmul.f32 %v46_v7, %v46_v7  ;;  %1561 = vrcp.f32 %v46_v7  ;;  %v1480_v40 = vpack.c.bf16 %v1709_v11, %v1707_v10  ;;  %p1616_p2 = scmp.ne.s32.totalorder %s1319_s11, %s1615_s12  ;;  %p1621_p4 = scmp.lt.s32.totalorder %s1615_s12, %s1615_s12 }
  0x2d   :  { %v1722_v18 = vsub.f32 %v77_v9, %v1711_v12  ;;  %v173_v21 = vsub.f32 %v1707_v10, %v172_v15  ;;  %v180_v22 = vsub.f32 %v1709_v11, %v179_v16  ;;  %v1732_v23 = vsub.f32 %v80_v13, %v1717_v17 }
  0x2e   :  { %v51_v25 = vmul.f32 %v49_v19, %v45_v5  ;;  %v50_v26 = vmul.f32 %v48_v20, %v48_v20  ;;  %v1488_v0 = vpack.c.bf16 %v179_v16, %v172_v15  ;;  %p1622_p5 = por %p1621_p4, %p1620_p3 }
  0x2f   :  { %v151_v24 = vand.u32 4294901760, %v1722_v18  ;;  %v174_v27 = vand.u32 4294901760, %v173_v21  ;;  %v181_v28 = vand.u32 4294901760, %v180_v22  ;;  %v161_v29 = vand.u32 4294901760, %v1732_v23 }
  0x30   :  { %v53_v31 = vmul.f32 %v51_v25, %v45_v5  ;;  %v52_v32 = vmul.f32 %v50_v26, %v46_v7  ;;  %v61_v35 = vmul.f32 -28.0, %v51_v25  ;;  %p1623_p6 = pnand %p1622_p5, %p1616_p2 }
  0x31   :  { %v152_v30 = vsub.f32 %v1722_v18, %v151_v24  ;;  %v1476_v33 = vpack.c.bf16 %v181_v28, %v174_v27  ;;  %v162_v34 = vsub.f32 %v1732_v23, %v161_v29 }
  0x32   :  { %v55_v37 = vmul.f32 %v53_v31, %v45_v5  ;;  %v54_v38 = vmul.f32 %v52_v32, %v46_v7  ;;  %v65_v41 = vmul.f32 48.0, %v53_v31  ;;  %v62_v42 = vmul.f32 -28.0, %v52_v32 }
  0x33   :  { %v153_v36 = vand.u32 4294901760, %v152_v30  ;;  %1477 = vmatprep.subr.bf16.mxu0 %v1476_v33  ;;  %v163_v39 = vand.u32 4294901760, %v162_v34  ;;  %1501 = vmatprep.subr.bf16.mxu1 %v1476_v33  ;;  %v1647_v31 = vmov 2102212464  }
  0x34   :  { %v1560_v43 = vpop.eup %1559  ;;  %v56_v44 = vmul.f32 %v54_v38, %v46_v7  ;;  %v69_v46 = vmul.f32 -21.0, %v55_v37  ;;  %v66_v47 = vmul.f32 48.0, %v54_v38  ;;  %v1649_v37 = vmov 1326507024  }
  0x35   :  { %1392 = vmatprep.mubr.f32.mxu0 %v153_v36  ;;  %v63_v45 = vadd.f32 %v1560_v43, %v61_v35  ;;  %v1650_v43 = vmov 683565275  }
  0x36   :  { %1393 = vmatmul.mubr.f32.vlgmr.msra.gmra.mrb[0].mxu0 %v163_v39  ;;  %v1562_v48 = vpop.eup %1561  ;;  %v70_v51 = vmul.f32 -21.0, %v56_v44 }
  0x37   :  { %1479 = vmatpush3.bf16.msra.mxu0 %v1476_v33  ;;  %1399 = vmatprep.mubr.f32.mxu0 %v1711_v12  ;;  %v67_v49 = vadd.f32 %v65_v41, %v63_v45  ;;  %v64_v50 = vadd.f32 %v1562_v48, %v62_v42  ;;  %v1651_v45 = vmov 2475754826  }
  0x38   :  { %1481 = vmatprep.subr.bf16.mxu0 %v1480_v40 }
  0x39   :  { %v71_v52 = vadd.f32 %v69_v46, %v67_v49  ;;  %v68_v53 = vadd.f32 %v66_v47, %v64_v50 }
  0x3b   :  { %v585_v54 = vsel %vm75_vm0, %v71_v52, 0  ;;  %v72_v55 = vadd.f32 %v70_v51, %v68_v53  ;;  %v1652_v51 = vmov 2131351028  }
  0x3c   :  { %v657_v56 = vand.u32 4294901760, %v585_v54 }
  0x3d   :  { %v588_v57 = vsel %vm75_vm0, %v72_v55, 0 }
  0x3e   :  { %1400 = vmatmul.mubr.f32.vlgmr.msra.gmra.mrb[0].mxu0 %v1717_v17  ;;  %v658_v58 = vsub.f32 %v585_v54, %v657_v56  ;;  %v667_v59 = vand.u32 4294901760, %v588_v57 }
  0x3f   :  { %1483 = vmatpush3.bf16.msra.mxu0 %v1480_v40  ;;  %1406 = vmatprep.mubr.f32.mxu0 %v1722_v18 }
  0x40   :  { %1485 = vmatprep.subr.bf16.mxu0 %v1704_v8  ;;  %v659_v60 = vand.u32 4294901760, %v658_v58  ;;  %v668_v61 = vsub.f32 %v588_v57, %v667_v59 }
  0x42   :  { %v660_v62 = vsub.f32 %v658_v58, %v659_v60  ;;  %v669_v63 = vand.u32 4294901760, %v668_v61 }
  0x44   :  { %v661_v1 = vand.u32 4294901760, %v660_v62  ;;  %v670_v2 = vsub.f32 %v668_v61, %v669_v63 }
  0x46   :  { %1407 = vmatmul.mubr.f32.vlgmr.msra.gmra.mrb[0].mxu0 %v1732_v23  ;;  %v671_v3 = vand.u32 4294901760, %v670_v2  ;;  %1434 = vmatprep.mubr.f32.mxu1 %v661_v1 }
  0x47   :  { %1487 = vmatpush3.bf16.msra.mxu0 %v1704_v8  ;;  %1413 = vmatprep.mubr.f32.mxu0 %v151_v24 }
  0x48   :  { %1489 = vmatprep.subr.bf16.mxu0 %v1488_v0  ;;  %1435 = vmatmul.mubr.f32.vlgmr.msra.gmra.mrb[0].mxu1 %v671_v3 }
  0x49   :  { %1503 = vmatpush3.bf16.msra.mxu1 %v1476_v33  ;;  %1441 = vmatprep.mubr.f32.mxu1 %v657_v56  ;;  %v1648_v33 = vmov 920167782  }
  0x4a   :  { %1505 = vmatprep.subr.bf16.mxu1 %v1480_v40 }
  0x4e   :  { %1414 = vmatmul.mubr.f32.vlgmr.msra.gmra.mrb[0].mxu0 %v161_v29 }
  0x4f   :  { %1491 = vmatpush3.bf16.msra.mxu0 %v1488_v0  ;;  %1420 = vmatprep.mubr.f32.mxu0 %v1711_v12 }
  0x50   :  { %1493 = vmatprep.subr.bf16.mxu0 %v1704_v8  ;;  %1442 = vmatmul.mubr.f32.vlgmr.msra.gmra.mrb[0].mxu1 %v667_v59 }
  0x51   :  { %1507 = vmatpush3.bf16.msra.mxu1 %v1480_v40  ;;  %1448 = vmatprep.mubr.f32.mxu1 %v658_v58 }
  0x52   :  { %1509 = vmatprep.subr.bf16.mxu1 %v1704_v8 }
  0x56   :  { %1421 = vmatmul.mubr.f32.vlgmr.msra.gmra.mrb[0].mxu0 %v1717_v17 }
  0x57   :  { %1495 = vmatpush3.bf16.msra.mxu0 %v1704_v8  ;;  %1427 = vmatprep.mubr.f32.mxu0 %v1711_v12 }
  0x58   :  { %1449 = vmatmul.mubr.f32.vlgmr.msra.gmra.mrb[0].mxu1 %v668_v61 }
  0x59   :  { %1511 = vmatpush3.bf16.msra.mxu1 %v1704_v8  ;;  %1455 = vmatprep.mubr.f32.mxu1 %v659_v60 }
  0x5a   :  { %1513 = vmatprep.subr.bf16.mxu1 %v1488_v0 }
  0x5e   :  { %1428 = vmatmul.mubr.f32.vlgmr.msra.gmra.mrb[0].mxu0 %v1717_v17 }
  0x60   :  { %1456 = vmatmul.mubr.f32.vlgmr.msra.gmra.mrb[0].mxu1 %v669_v63 }
  0x61   :  { %1515 = vmatpush3.bf16.msra.mxu1 %v1488_v0  ;;  %1462 = vmatprep.mubr.f32.mxu1 %v657_v56 }
  0x62   :  { %1517 = vmatprep.subr.bf16.mxu1 %v1704_v8 }
  0x68   :  { %1463 = vmatmul.mubr.f32.vlgmr.msra.gmra.mrb[0].mxu1 %v667_v59 }
  0x69   :  { %1519 = vmatpush3.bf16.msra.mxu1 %v1704_v8  ;;  %1469 = vmatprep.mubr.f32.mxu1 %v657_v56 }
  0x70   :  { %1470 = vmatmul.mubr.f32.vlgmr.msra.gmra.mrb[0].mxu1 %v667_v59 }
 0x131   :  { %v1429_v5 = vpop.f32.mrb[0].mxu0 }
 0x132   :  { %v1765_v6 = vmul.f32 %v1429_v5, %v1331_v4  ;;  %v574_v7 = vpop.f32.mrb[1].mxu0 }
 0x133   :  { %v1767_v9 = vmul.f32 %v1331_v4, %v574_v7 }
 0x134   :  { %v1208_v10 = vand.u32 2139095040, %v1765_v6  ;;  %v1205_v11 = vand.u32 2147483647, %v1765_v6  ;;  %vm1207_vm15 = vcmp.lt.s32.totalorder %v1765_v6, 0 }
 0x135   :  { %v1104_v12 = vand.u32 2139095040, %v1767_v9  ;;  %v1101_v16 = vand.u32 2147483647, %v1767_v9 }
 0x136   :  { %v1209_v13 = vshrl.u32 %v1208_v10, 23  ;;  %v1212_v15 = vand.u32 8388607, %v1205_v11  ;;  %vm1206_vm0 = vcmp.le.f32.partialorder %v1205_v11, 0.7853982 }
 0x137   :  { %v1105_v8 = vshrl.u32 %v1104_v12, 23  ;;  %v1777_v21 = vand.u32 8388607, %v1101_v16 }
 0x138   :  { %v1336_v14 = vadd.s32 4294967169, %v1209_v13  ;;  %v1213_v20 = vor.u32 8388608, %v1212_v15 }
 0x139   :  { %v1332_v17 = vadd.s32 4294967169, %v1105_v8  ;;  %v1109_v30 = vor.u32 8388608, %v1777_v21 }
 0x13a   :  { %v1215_v18 = vadd.s32 1, %v1336_v14  ;;  %v1781_v29 = vshll.u32 %v1213_v20, 8 }
 0x13b   :  { %v1111_v19 = vadd.s32 1, %v1332_v17 }
 0x13c   :  { %vm1216_vm1 = vcmp.gt.s32.totalorder %v1215_v18, 0 }
 0x13d   :  { %v1217_v22 = vsel %vm1216_vm1, %v1215_v18, 0  ;;  %vm1112_vm2 = vcmp.gt.s32.totalorder %v1111_v19, 0  ;;  %vm1103_vm1 = vcmp.lt.s32.totalorder %v1767_v9, 0 }
 0x13e   :  { %v1218_v23 = vshrl.u32 %v1217_v22, 5  ;;  %v1219_v24 = vand.u32 31, %v1217_v22  ;;  %v1113_v25 = vsel %vm1112_vm2, %v1111_v19, 0  ;;  %vm1102_vm2 = vcmp.le.f32.partialorder %v1101_v16, 0.7853982 }
 0x13f   :  { %v1115_v26 = vand.u32 31, %v1113_v25  ;;  %v1779_v28 = vshrl.u32 %v1113_v25, 5 }
 0x140   :  { %v1220_v27 = vsub.s32 32, %v1219_v24  ;;  %v1231_v32 = vshll.u32 %v1647_v31, %v1219_v24  ;;  %v1234_v34 = vshll.u32 %v1648_v33, %v1219_v24  ;;  %vm1240_vm3 = vcmp.lt.s32.totalorder %v1218_v23, 4 }
 0x141   :  { %v1116_v35 = vsub.s32 32, %v1115_v26  ;;  %v1127_v39 = vshll.u32 %v1647_v31, %v1115_v26  ;;  %v1130_v40 = vshll.u32 %v1648_v33, %v1115_v26  ;;  %v1222_v44 = vshll.u32 %v1650_v43, %v1219_v24 }
 0x142   :  { %v1232_v36 = vshrl.u32 %v1648_v33, %v1220_v27  ;;  %v1235_v38 = vshrl.u32 %v1649_v37, %v1220_v27  ;;  %v1223_v46 = vshrl.u32 %v1651_v45, %v1220_v27  ;;  %v1225_v50 = vshll.u32 %v1651_v45, %v1219_v24 }
 0x143   :  { %v1128_v41 = vshrl.u32 %v1648_v33, %v1116_v35  ;;  %v1131_v42 = vshrl.u32 %v1649_v37, %v1116_v35  ;;  %v1784_v49 = vpop.f32.mrb[0].mxu1  ;;  %v1226_v52 = vshrl.u32 %v1652_v51, %v1220_v27  ;;  %vm1136_vm4 = vcmp.lt.s32.totalorder %v1779_v28, 4 }
 0x144   :  { %v1233_v47 = vor.u32 %v1232_v36, %v1231_v32  ;;  %v1236_v48 = vor.u32 %v1235_v38, %v1234_v34  ;;  %v1224_v53 = vor.u32 %v1223_v46, %v1222_v44  ;;  %v1228_v54 = vshll.u32 %v1652_v51, %v1219_v24  ;;  %v1787_v56 = vpop.f32.mrb[1].mxu1 }
 0x145   :  { %v1229_v55 = vshrl.u32 %v1647_v31, %v1220_v27  ;;  %v1221_v59 = vshrl.u32 %v1650_v43, %v1220_v27  ;;  %v1227_v60 = vor.u32 %v1226_v52, %v1225_v50  ;;  %v1129_v61 = vor.u32 %v1128_v41, %v1127_v39 }
 0x146   :  { %v1246_v57 = vsel %vm1240_vm3, %v1233_v47, 920167782  ;;  %v1250_v58 = vsel %vm1240_vm3, %v1236_v48, 1326507024  ;;  %v1132_v62 = vor.u32 %v1131_v42, %v1130_v40  ;;  %vm1237_vm5 = vcmp.lt.s32.totalorder %v1218_v23, 1 }
 0x147   :  { %v1230_v63 = vor.u32 %v1229_v55, %v1228_v54  ;;  %vm1238_vm6 = vcmp.lt.s32.totalorder %v1218_v23, 2  ;;  %vm1239_vm7 = vcmp.lt.s32.totalorder %v1218_v23, 3  ;;  %v1241_v0 = vsel %vm1237_vm5, %v1221_v59, %v1224_v53 }
 0x148   :  { %v1245_v1 = vsel %vm1237_vm5, %v1224_v53, %v1227_v60  ;;  %v1251_v5 = vsel %vm1239_vm7, %v1233_v47, %v1250_v58  ;;  %v1118_v13 = vshll.u32 %v1650_v43, %v1115_v26  ;;  %v1119_v17 = vshrl.u32 %v1651_v45, %v1116_v35 }
 0x149   :  { %v1242_v2 = vsel %vm1240_vm3, %v1230_v63, 2102212464  ;;  %v1247_v3 = vsel %vm1239_vm7, %v1230_v63, %v1246_v57  ;;  %v1249_v4 = vsel %vm1237_vm5, %v1227_v60, %v1230_v63  ;;  %v1146_v18 = vsel %vm1136_vm4, %v1132_v62, 1326507024 }
 0x14a   :  { %v1243_v7 = vsel %vm1239_vm7, %v1227_v60, %v1242_v2  ;;  %v1248_v10 = vsel %vm1238_vm6, %v1245_v1, %v1247_v3  ;;  %v1252_v12 = vsel %vm1238_vm6, %v1249_v4, %v1251_v5  ;;  %v1121_v22 = vshll.u32 %v1651_v45, %v1115_v26 }
 0x14b   :  { %v1244_v8 = vsel %vm1238_vm6, %v1241_v0, %v1243_v7  ;;  %v1793_v14 = vmul.u32.u64.low %v1781_v29, %v1252_v12  ;;  %v1794_v15 = vmul.u32.u64.high %v1781_v29, %v1252_v12, %v1793_v14  ;;  %v1120_v23 = vor.u32 %v1119_v17, %v1118_v13 }
 0x14c   :  { %v1799_v19 = vmul.u32.u64.low %v1781_v29, %v1248_v10  ;;  %v1800_v20 = vmul.u32.u64.high %v1781_v29, %v1248_v10, %v1799_v19  ;;  %v1122_v24 = vshrl.u32 %v1652_v51, %v1116_v35  ;;  %v1124_v25 = vshll.u32 %v1652_v51, %v1115_v26 }
 0x14d   :  { %v1125_v27 = vshrl.u32 %v1647_v31, %v1116_v35  ;;  %v1142_v32 = vsel %vm1136_vm4, %v1129_v61, 920167782  ;;  %v1260_v33 = vmul.u32 %v1781_v29, %v1244_v8  ;;  %v1117_v34 = vshrl.u32 %v1650_v43, %v1116_v35 }
 0x14e   :  { %v1149_v36 = vshll.u32 %v1109_v30, 8  ;;  %vm1262_vm8 = vc.u32 %v1794_v15, %v1799_v19  ;;  %v1123_v37 = vor.u32 %v1122_v24, %v1121_v22  ;;  %vm1135_vm9 = vcmp.lt.s32.totalorder %v1779_v28, 3 }
 0x14f   :  { %v1126_v38 = vor.u32 %v1125_v27, %v1124_v25  ;;  %v1263_v39 = vadd.s32 1, %v1800_v20  ;;  %vm1133_vm10 = vcmp.lt.s32.totalorder %v1779_v28, 1  ;;  %vm1134_vm11 = vcmp.lt.s32.totalorder %v1779_v28, 2 }
 0x150   :  { %v1147_v26 = vsel %vm1135_vm9, %v1129_v61, %v1146_v18  ;;  %v1141_v31 = vsel %vm1133_vm10, %v1120_v23, %v1123_v37  ;;  %v1137_v40 = vsel %vm1133_vm10, %v1117_v34, %v1120_v23  ;;  %v1261_v5 = vadd.s32 %v1799_v19, %v1794_v15 }
 0x151   :  { %v1138_v29 = vsel %vm1136_vm4, %v1126_v38, 2102212464  ;;  %v1143_v35 = vsel %vm1135_vm9, %v1126_v38, %v1142_v32  ;;  %v1145_v21 = vsel %vm1133_vm10, %v1123_v37, %v1126_v38  ;;  %v1264_v30 = vsel %vm1262_vm8, %v1263_v39, %v1800_v20 }
 0x152   :  { %v1144_v41 = vsel %vm1134_vm11, %v1141_v31, %v1143_v35  ;;  %v1148_v42 = vsel %vm1134_vm11, %v1145_v21, %v1147_v26  ;;  %v1265_v43 = vadd.s32 %v1264_v30, %v1260_v33  ;;  %v1139_v44 = vsel %vm1135_vm9, %v1123_v37, %v1138_v29 }
 0x153   :  { %v1819_v45 = vmul.u32.u64.low %v1149_v36, %v1148_v42  ;;  %v1820_v46 = vmul.u32.u64.high %v1149_v36, %v1148_v42, %v1819_v45  ;;  %v1822_v47 = vmul.u32.u64.low %v1149_v36, %v1144_v41  ;;  %v1823_v48 = vmul.u32.u64.high %v1149_v36, %v1144_v41, %v1822_v47 }
 0x154   :  { %v1266_v50 = vadd.s32 536870912, %v1265_v43  ;;  %v1140_v51 = vsel %vm1134_vm11, %v1137_v40, %v1139_v44  ;;  %vm1297_vm6 = vweird.f32 %v1765_v6  ;;  %vm1193_vm10 = vweird.f32 %v1767_v9 }
 0x155   :  { %vm1158_vm12 = vc.u32 %v1820_v46, %v1822_v47  ;;  %v1159_v53 = vadd.s32 1, %v1823_v48  ;;  %v1156_v55 = vmul.u32 %v1149_v36, %v1140_v51  ;;  %v1157_v32 = vadd.s32 %v1822_v47, %v1820_v46 }
 0x156   :  { %v1267_v52 = vshrl.u32 %v1266_v50, 30 }
 0x157   :  { %v1160_v57 = vsel %vm1158_vm12, %v1159_v53, %v1823_v48 }
 0x158   :  { %v1268_v54 = vshll.u32 %v1267_v52, 30  ;;  %v1161_v59 = vadd.s32 %v1160_v57, %v1156_v55  ;;  %v1291_v19 = vsub.s32 4, %v1267_v52 }
 0x15a   :  { %v1269_v58 = vsub.s32 %v1265_v43, %v1268_v54  ;;  %v1162_v61 = vadd.s32 536870912, %v1161_v59  ;;  %v1292_v35 = vsel %vm1207_vm15, %v1291_v19, %v1267_v52 }
 0x15b   :  { %v1294_v40 = vsel %vm1206_vm0, 0, %v1292_v35 }
 0x15c   :  { %v1271_v60 = vsub.s32 0, %v1269_v58  ;;  %v1163_v63 = vshrl.u32 %v1162_v61, 30  ;;  %v1298_v45 = vadd.s32 3, %v1294_v40 }
 0x15e   :  { %v1337_v62 = vmin.u32 %v1271_v60, %v1269_v58  ;;  %v1164_v1 = vshll.u32 %v1163_v63, 30  ;;  %v1187_v44 = vsub.s32 4, %v1163_v63  ;;  %v1299_v48 = vand.u32 3, %v1298_v45 }
 0x160   :  { %v1273_v0 = vclz %v1337_v62  ;;  %v1165_v28 = vsub.s32 %v1161_v59, %v1164_v1  ;;  %v1188_v47 = vsel %vm1103_vm1, %v1187_v44, %v1163_v63  ;;  %vm1304_vm3 = vcmp.eq.s32.totalorder %v1299_v48, 2 }
 0x161   :  { %v1190_v52 = vsel %vm1102_vm2, 0, %v1188_v47  ;;  %vm1301_vm4 = vcmp.eq.s32.totalorder %v1299_v48, 0  ;;  %vm1300_vm5 = vcmp.lt.s32.totalorder %v1299_v48, 2 }
 0x162   :  { %v1338_v2 = vadd.s32 4294967294, %v1273_v0  ;;  %v1167_v4 = vsub.s32 0, %v1165_v28 }
 0x164   :  { %vm1339_vm13 = vcmp.lt.s32.totalorder %v1338_v2, 0  ;;  %v1333_v12 = vmin.u32 %v1167_v4, %v1165_v28 }
 0x165   :  { %v1276_v3 = vsel %vm1339_vm13, 0, %v1338_v2 }
 0x166   :  { %v1277_v7 = vsub.s32 32, %v1276_v3  ;;  %v1281_v10 = vsub.s32 4294967266, %v1276_v3  ;;  %v1278_v13 = vshll.u32 %v1269_v58, %v1276_v3  ;;  %v1169_v17 = vclz %v1333_v12 }
 0x167   :  { %v1194_v58 = vadd.s32 3, %v1190_v52 }
 0x168   :  { %v1279_v8 = vshrl.u32 %v1261_v5, %v1277_v7  ;;  %v1282_v14 = vadd.s32 127, %v1281_v10  ;;  %v1334_v22 = vadd.s32 4294967294, %v1169_v17 }
 0x169   :  { %v1195_v62 = vand.u32 3, %v1194_v58 }
 0x16a   :  { %v1280_v18 = vor.u32 %v1279_v8, %v1278_v13  ;;  %v1283_v20 = vshll.u32 %v1282_v14, 23  ;;  %vm1335_vm14 = vcmp.lt.s32.totalorder %v1334_v22, 0 }
 0x16b   :  { %v1172_v27 = vsel %vm1335_vm14, 0, %v1334_v22  ;;  %vm1200_vm7 = vcmp.eq.s32.totalorder %v1195_v62, 2  ;;  %vm1197_vm8 = vcmp.eq.s32.totalorder %v1195_v62, 0  ;;  %vm1196_vm9 = vcmp.lt.s32.totalorder %v1195_v62, 2 }
 0x16c   :  { %v1284_v23 = vor.u32 4788187, %v1283_v20  ;;  %v1287_v25 = vcvt.s32.f32 %v1280_v18  ;;  %v1173_v33 = vsub.s32 32, %v1172_v27  ;;  %v1177_v34 = vsub.s32 4294967266, %v1172_v27 }
 0x16d   :  { %v1174_v36 = vshll.u32 %v1165_v28, %v1172_v27 }
 0x16e   :  { %v1285_v24 = vand.u32 2147483647, %v1284_v23  ;;  %v1175_v37 = vshrl.u32 %v1157_v32, %v1173_v33  ;;  %v1178_v38 = vadd.s32 127, %v1177_v34 }
 0x170   :  { %v1288_v15 = vmul.f32 %v1287_v25, %v1285_v24  ;;  %v1176_v26 = vor.u32 %v1175_v37, %v1174_v36  ;;  %v1179_v29 = vshll.u32 %v1178_v38, 23 }
 0x172   :  { %v1289_v39 = vxor.u32 2147483648, %v1288_v15  ;;  %v1180_v30 = vor.u32 4788187, %v1179_v29  ;;  %v1183_v42 = vcvt.s32.f32 %v1176_v26 }
 0x174   :  { %v1290_v31 = vsel %vm1207_vm15, %v1289_v39, %v1288_v15  ;;  %v1181_v41 = vand.u32 2147483647, %v1180_v30 }
 0x175   :  { %v1293_v21 = vsel %vm1206_vm0, %v1765_v6, %v1290_v31 }
 0x176   :  { %1563 = vcosq.f32 %v1293_v21  ;;  %v1184_v43 = vmul.f32 %v1183_v42, %v1181_v41 }
 0x177   :  { %1565 = vsinq.f32 %v1293_v21 }
 0x178   :  { %v1185_v46 = vxor.u32 2147483648, %v1184_v43 }
 0x17a   :  { %v1186_v11 = vsel %vm1103_vm1, %v1185_v46, %v1184_v43 }
 0x17b   :  { %v1189_v50 = vsel %vm1102_vm2, %v1767_v9, %v1186_v11 }
 0x17c   :  { %1567 = vcosq.f32 %v1189_v50 }
 0x17d   :  { %1569 = vsinq.f32 %v1189_v50 }
 0x180   :  { %v1564_v51 = vpop.eup %1563 }
 0x181   :  { %v1566_v53 = vpop.eup %1565  ;;  %v1305_v54 = vxor.u32 2147483648, %v1564_v51 }
 0x182   :  { %v1302_v55 = vxor.u32 2147483648, %v1566_v53 }
 0x183   :  { %v1306_v57 = vsel %vm1304_vm3, %v1305_v54, %v1566_v53 }
 0x184   :  { %v1303_v59 = vsel %vm1301_vm4, %v1564_v51, %v1302_v55 }
 0x185   :  { %v1307_v16 = vsel %vm1300_vm5, %v1303_v59, %v1306_v57 }
 0x186   :  { %v1308_v60 = vsel %vm1297_vm6, nan, %v1307_v16  ;;  %v1568_v63 = vpop.eup %1567 }
 0x187   :  { %v1310_v61 = vmul.f32 %v1784_v49, %v1308_v60  ;;  %v1570_v0 = vpop.eup %1569  ;;  %v1201_v1 = vxor.u32 2147483648, %v1568_v63 }
 0x188   :  { %v1198_v2 = vxor.u32 2147483648, %v1570_v0 }
 0x189   :  { %1312 = vst [vmem:[#allocation7 + $0x8] sm:$0xff] %v1310_v61  ;;  %v1202_v28 = vsel %vm1200_vm7, %v1201_v1, %v1570_v0 }
 0x18a   :  { %v1199_v3 = vsel %vm1197_vm8, %v1568_v63, %v1198_v2 }
 0x18b   :  { %v1203_v6 = vsel %vm1196_vm9, %v1199_v3, %v1202_v28 }
 0x18c   :  { %v1204_v4 = vsel %vm1193_vm10, nan, %v1203_v6 }
 0x18d   :  { %v1309_v5 = vmul.f32 %v1204_v4, %v1787_v56 }
 0x18f   :  { %1311 = vst [vmem:[#allocation7] sm:$0xff] %v1309_v5 }
 0x190   :  { %1626 = shalt.err (!%p1623_p6)
}
 0x191   :  { %s1627_s15 = scalar_lea.hbm %s1862_s3, 256 }
 0x192   :  { %p1628_p7 = scmp.ne.s32.totalorder %s1862_s3, %s1627_s15  ;;  %p1631_p8 = scmp.lt.u32.totalorder %s1627_s15, %s1862_s3 }
 0x194   :  { %p1633_p9 = pnand %p1631_p8, %p1628_p7 }
 0x196   :  { %1636 = shalt.err (!%p1633_p9)
}
 0x197   :  { %1324 = dma.vmem_to_hbm [thread:$0]  %s1319_s11, 256, %s1862_s3, [#allocation4], %s1644_s22, %s1644_s22, %s1645_s23  }
 0x198   :  { %1641 = dma.done.wait [#allocation4], 256  }
 0x199   :  { %1642 = vsyncadd [#allocation4], 4294967040 }
 0x19a   :  { %1328 = vsyncpa [#allocation3], 1 }
 0x19b   :  { %1329 = vsyncpa [#allocation6], 1 }
 0x19c   :  { %1330 = vsyncpa [#allocation4], 1 }

</bundles_post_ra>
